<compile_context>
chip_gen: v7x
topology: tpu7x:2x2x1
jax: 0.10.0
libtpu: 0.0.40
codegen_flags: <defaults>
</compile_context>

<pallas_src>
import functools

import jax
import jax.numpy as jnp
from jax.experimental import pallas as pl
from jax.experimental.pallas import tpu as pltpu


# ----------------------------------------------------------------------------
# Tiling helpers
# ----------------------------------------------------------------------------
def _default_target_bytes():
    """~2 MiB of input per grid step; ~4 MiB on v7x (faster HBM makes the fixed
    per-step overhead a larger tax, and 64 MiB VMEM is still ample headroom)."""
    try:
        kind = jax.devices()[0].device_kind.lower()
    except Exception:  # pragma: no cover - device query should not fail
        kind = ""
    if "v7" in kind or "tpu7" in kind:
        return 4 << 20
    return 2 << 20


def _row_block(num_rows, seq_len, itemsize, target_bytes):
    """Rows per grid step.

    * multiple of 8 (16 for sub-32-bit dtypes: sublane packing),
    * sized so one input block streams ~target_bytes from HBM (cap by bytes,
      not rows),
    * clamped so the grid has >= 2 steps whenever R > 2*sublane, letting
      dimension_semantics=("parallel",) keep both v7x TensorCores busy.
    """
    m = 8 if itemsize >= 4 else 16
    if num_rows <= 2 * m:
        return num_rows            # single block; block dim == full dim is legal
    row_bytes = seq_len * itemsize
    tr = max(m, (target_bytes // row_bytes // m) * m)
    half = -(-num_rows // 2)       # ceil(R/2)
    half = -(-half // m) * m       # rounded up to a multiple of the sublane unit
    return min(tr, half)


def _rows(p, B, C):
    """(1, C, 1) per-channel parameter -> (B*C, 1) per-row, f32 (tiny)."""
    return jnp.broadcast_to(p.reshape(1, C).astype(jnp.float32),
                            (B, C)).reshape(B * C, 1)


# ----------------------------------------------------------------------------
# Kernels
# ----------------------------------------------------------------------------
def _revin_norm_kernel(x_ref, w_ref, b_ref, y_ref, mean_ref, std_ref, *, eps):
    x = x_ref[...].astype(jnp.float32)                    # (TR, L)
    mean = jnp.mean(x, axis=-1, keepdims=True)            # (TR, 1)
    xc = x - mean                                         # live only for the reduce
    var = jnp.mean(xc * xc, axis=-1, keepdims=True)       # biased variance
    std = jnp.sqrt(var + eps)
    inv_std = 1.0 / std                                   # tiny (TR,1); matches stored std
    scale = inv_std * w_ref[...]                          # fold affine into per-row scale
    offset = b_ref[...] - mean * scale                    # fold mean into per-row offset
    y_ref[...] = (x * scale + offset).astype(y_ref.dtype)  # single FMA over the big tile
    mean_ref[...] = mean
    std_ref[...] = std


def _revin_denorm_kernel(x_ref, scale_ref, offset_ref, y_ref):
    # y = ((x - b) / safe_w) * std + mean, precomputed wrapper-side into
    # per-row scale/offset — a single FMA over the big tile.
    x = x_ref[...].astype(jnp.float32)                    # (TR, L)
    y_ref[...] = (x * scale_ref[...] + offset_ref[...]).astype(y_ref.dtype)


# ----------------------------------------------------------------------------
# Wrappers
# ----------------------------------------------------------------------------
def revin_norm(x, affine_weight, affine_bias, eps=1e-5):
    """Returns (x_norm, mean, stdev).  x: (B, C, L); stats: (B, C, 1) f32."""
    B, C, L = x.shape
    R = B * C
    TR = _row_block(R, L, x.dtype.itemsize, _default_target_bytes())
    grid = (pl.cdiv(R, TR),)

    x2 = x.reshape(R, L)
    w_rows = _rows(affine_weight, B, C)
    b_rows = _rows(affine_bias, B, C)

    kernel = functools.partial(_revin_norm_kernel, eps=eps)
    y2, mean2, std2 = pl.pallas_call(
        kernel,
        out_shape=(
            jax.ShapeDtypeStruct((R, L), x.dtype),
            jax.ShapeDtypeStruct((R, 1), jnp.float32),
            jax.ShapeDtypeStruct((R, 1), jnp.float32),
        ),
        grid_spec=pltpu.PrefetchScalarGridSpec(
            num_scalar_prefetch=0,
            grid=grid,
            in_specs=[
                pl.BlockSpec((TR, L), lambda i: (i, 0)),
                pl.BlockSpec((TR, 1), lambda i: (i, 0)),
                pl.BlockSpec((TR, 1), lambda i: (i, 0)),
            ],
            out_specs=[
                pl.BlockSpec((TR, L), lambda i: (i, 0)),
                pl.BlockSpec((TR, 1), lambda i: (i, 0)),
                pl.BlockSpec((TR, 1), lambda i: (i, 0)),
            ],
        ),
        compiler_params=pltpu.CompilerParams(
            dimension_semantics=("parallel",),       # v7x: shard rows over 2 TCs
            vmem_limit_bytes=32 * 1024 * 1024),      # 2-4 MiB blocks, double-buffered
    )(x2, w_rows, b_rows)

    return (y2.reshape(B, C, L),
            mean2.reshape(B, C, 1),
            std2.reshape(B, C, 1))


def revin_denorm(x, affine_weight, affine_bias, mean, stdev, eps=1e-5):
    """Inverse transform.  x: (B, C, L), mean/stdev: (B, C, 1)."""
    B, C, L = x.shape
    R = B * C
    TR = _row_block(R, L, x.dtype.itemsize, _default_target_bytes())
    grid = (pl.cdiv(R, TR),)

    # All per-row / per-channel math is loop-invariant: hoist the torch-style
    # safe-weight fixup (w + eps if min|w| < eps — a GLOBAL predicate, matching
    # the reference module), its reciprocal, and the scale/offset folding out
    # of the kernel into tiny (R, 1) wrapper-side ops.
    w = affine_weight.astype(jnp.float32)
    safe_w = jnp.where(jnp.min(jnp.abs(w)) < eps, w + eps, w)
    inv_w = 1.0 / safe_w

    x2 = x.reshape(R, L)
    invw_rows = _rows(inv_w, B, C)
    b_rows = _rows(affine_bias, B, C)
    mean_rows = mean.astype(jnp.float32).reshape(R, 1)
    std_rows = stdev.astype(jnp.float32).reshape(R, 1)
    scale_rows = invw_rows * std_rows                    # (R, 1)
    offset_rows = mean_rows - b_rows * scale_rows        # (R, 1)

    y2 = pl.pallas_call(
        _revin_denorm_kernel,
        out_shape=jax.ShapeDtypeStruct((R, L), x.dtype),
        grid_spec=pltpu.PrefetchScalarGridSpec(
            num_scalar_prefetch=0,
            grid=grid,
            in_specs=[
                pl.BlockSpec((TR, L), lambda i: (i, 0)),
                pl.BlockSpec((TR, 1), lambda i: (i, 0)),
                pl.BlockSpec((TR, 1), lambda i: (i, 0)),
            ],
            out_specs=pl.BlockSpec((TR, L), lambda i: (i, 0)),
        ),
        compiler_params=pltpu.CompilerParams(
            dimension_semantics=("parallel",),
            vmem_limit_bytes=32 * 1024 * 1024),
    )(x2, scale_rows, offset_rows)

    return y2.reshape(B, C, L)


class RevIN:
    """JAX/Pallas port of the PyTorch RevIN module (forward only)."""

    def __init__(self, num_features, eps=1e-5, affine=True):
        self.num_features = num_features
        self.eps = eps
        self.affine = affine
        # affine=False is handled by identity weight / zero bias, which makes
        # both kernels algebraically identical to the non-affine branch.
        self.affine_weight = jnp.ones((1, num_features, 1), jnp.float32)
        self.affine_bias = jnp.zeros((1, num_features, 1), jnp.float32)
        self.mean = None
        self.stdev = None

    def __call__(self, x, mode):
        if mode == 'norm':
            y, mean, stdev = revin_norm(
                x, self.affine_weight, self.affine_bias, self.eps)
            # TODO(synk): mirroring the torch module, stats live as Python
            # object state; this is not jit/vmap-friendly (use the functional
            # revin_norm/revin_denorm API for composition).
            self.mean, self.stdev = mean, stdev
            return y
        elif mode == 'denorm':
            if self.mean is None or self.stdev is None:
                return x
            return revin_denorm(
                x, self.affine_weight, self.affine_bias,
                self.mean, self.stdev, self.eps)
        else:
            raise NotImplementedError(f"RevIN mode '{mode}' not implemented.")


# ----------------------------------------------------------------------------
# Reference (pure JAX) for verification
# ----------------------------------------------------------------------------
def _ref_norm(x, w, b, eps):
    mean = jnp.mean(x, axis=-1, keepdims=True)
    var = jnp.var(x, axis=-1, keepdims=True)          # biased (ddof=0)
    std = jnp.sqrt(var + eps)
    return (x - mean) / std * w + b, mean, std


def _ref_denorm(x, w, b, mean, std, eps):
    safe_w = jnp.where(jnp.min(jnp.abs(w)) < eps, w + eps, w)
    return (x - b) / safe_w * std + mean


if __name__ == "__main__":
    key = jax.random.PRNGKey(0)
    # Second shape exercises C / B*C not multiples of 8, L not a multiple of
    # 128, and a partial final row block (R=21, TR=16 -> 2 grid steps).
    for (B, C, L) in [(2, 4, 128), (3, 7, 96)]:
        key, sub = jax.random.split(key)
        x = jax.random.normal(sub, (B, C, L), dtype=jnp.float32) * 3.0 + 1.5

        revin = RevIN(num_features=C, eps=1e-5, affine=True)

        y = revin(x, 'norm')
        x_rec = revin(y, 'denorm')
        jax.block_until_ready((y, x_rec))

        y_ref, mean_ref, std_ref = _ref_norm(x, revin.affine_weight,
                                             revin.affine_bias, revin.eps)
        x_rec_ref = _ref_denorm(y_ref, revin.affine_weight, revin.affine_bias,
                                mean_ref, std_ref, revin.eps)

        assert jnp.allclose(y, y_ref, atol=1e-5, rtol=1e-5), f"norm mismatch {(B, C, L)}"
        assert jnp.allclose(revin.mean, mean_ref, atol=1e-5, rtol=1e-5), "mean mismatch"
        assert jnp.allclose(revin.stdev, std_ref, atol=1e-5, rtol=1e-5), "stdev mismatch"
        assert jnp.allclose(x_rec, x_rec_ref, atol=1e-5, rtol=1e-5), f"denorm mismatch {(B, C, L)}"
        assert jnp.allclose(x_rec, x, atol=1e-4, rtol=1e-4), f"round-trip mismatch {(B, C, L)}"

    print("KERNEL_OK")
</pallas_src>

<mosaic_0001>
module attributes {stable_mosaic.version = 11 : i64} {
  func.func @_revin_norm_kernel(%arg0: i32, %arg1: memref<8x128xf32, #tpu.memory_space<vmem>>, %arg2: memref<8x1xf32, #tpu.memory_space<vmem>>, %arg3: memref<8x1xf32, #tpu.memory_space<vmem>>, %arg4: memref<8x128xf32, #tpu.memory_space<vmem>>, %arg5: memref<8x1xf32, #tpu.memory_space<vmem>>, %arg6: memref<8x1xf32, #tpu.memory_space<vmem>>) attributes {dimension_semantics = [#tpu.dimension_semantics<parallel>], iteration_bounds = array<i64: 1>, scalar_prefetch = 0 : i64, scratch_operands = 0 : i64, tpu.core_type = #tpu.core_type<tc>, window_params = [{transform_indices = @transform_0, window_bounds = array<i64: 8, 128>}, {transform_indices = @transform_1, window_bounds = array<i64: 8, 1>}, {transform_indices = @transform_2, window_bounds = array<i64: 8, 1>}, {transform_indices = @transform_3, window_bounds = array<i64: 8, 128>}, {transform_indices = @transform_4, window_bounds = array<i64: 8, 1>}, {transform_indices = @transform_5, window_bounds = array<i64: 8, 1>}]} {
    %c0 = arith.constant 0 : index
    %c0_0 = arith.constant 0 : index
    %0 = vector.load %arg1[%c0, %c0_0] : memref<8x128xf32, #tpu.memory_space<vmem>>, vector<8x128xf32>
    %cst = arith.constant dense<0.000000e+00> : vector<8xf32>
    %1 = vector.multi_reduction <add>, %0, %cst [1] : vector<8x128xf32> to vector<8xf32>
    %2 = vector.shape_cast %1 : vector<8xf32> to vector<8x1xf32>
    %cst_1 = arith.constant 1.280000e+02 : f32
    %3 = vector.broadcast %cst_1 : f32 to vector<8x1xf32>
    %4 = arith.divf %2, %3 : vector<8x1xf32>
    %5 = vector.broadcast %4 : vector<8x1xf32> to vector<8x128xf32>
    %6 = arith.subf %0, %5 : vector<8x128xf32>
    %7 = arith.mulf %6, %6 : vector<8x128xf32>
    %cst_2 = arith.constant dense<0.000000e+00> : vector<8xf32>
    %8 = vector.multi_reduction <add>, %7, %cst_2 [1] : vector<8x128xf32> to vector<8xf32>
    %9 = vector.shape_cast %8 : vector<8xf32> to vector<8x1xf32>
    %cst_3 = arith.constant 1.280000e+02 : f32
    %10 = vector.broadcast %cst_3 : f32 to vector<8x1xf32>
    %11 = arith.divf %9, %10 : vector<8x1xf32>
    %cst_4 = arith.constant 9.99999974E-6 : f32
    %12 = vector.broadcast %cst_4 : f32 to vector<8x1xf32>
    %13 = arith.addf %11, %12 : vector<8x1xf32>
    %14 = math.sqrt %13 : vector<8x1xf32>
    %cst_5 = arith.constant 1.000000e+00 : f32
    %15 = vector.broadcast %cst_5 : f32 to vector<8x1xf32>
    %16 = arith.divf %15, %14 : vector<8x1xf32>
    %c0_6 = arith.constant 0 : index
    %c0_7 = arith.constant 0 : index
    %17 = vector.load %arg2[%c0_6, %c0_7] : memref<8x1xf32, #tpu.memory_space<vmem>>, vector<8x1xf32>
    %18 = arith.mulf %16, %17 : vector<8x1xf32>
    %c0_8 = arith.constant 0 : index
    %c0_9 = arith.constant 0 : index
    %19 = vector.load %arg3[%c0_8, %c0_9] : memref<8x1xf32, #tpu.memory_space<vmem>>, vector<8x1xf32>
    %20 = arith.mulf %4, %18 : vector<8x1xf32>
    %21 = arith.subf %19, %20 : vector<8x1xf32>
    %22 = vector.broadcast %18 : vector<8x1xf32> to vector<8x128xf32>
    %23 = arith.mulf %0, %22 : vector<8x128xf32>
    %24 = vector.broadcast %21 : vector<8x1xf32> to vector<8x128xf32>
    %25 = arith.addf %23, %24 : vector<8x128xf32>
    %c0_10 = arith.constant 0 : index
    %c0_11 = arith.constant 0 : index
    %26 = vector.load %arg4[%c0_10, %c0_11] : memref<8x128xf32, #tpu.memory_space<vmem>>, vector<8x128xf32>
    tpu.vector_store %arg4[%c0_10, %c0_11], %25 {strides = array<i32>} : memref<8x128xf32, #tpu.memory_space<vmem>>, vector<8x128xf32>,
    %c0_12 = arith.constant 0 : index
    %c0_13 = arith.constant 0 : index
    %27 = vector.load %arg5[%c0_12, %c0_13] : memref<8x1xf32, #tpu.memory_space<vmem>>, vector<8x1xf32>
    tpu.vector_store %arg5[%c0_12, %c0_13], %4 {strides = array<i32>} : memref<8x1xf32, #tpu.memory_space<vmem>>, vector<8x1xf32>,
    %c0_14 = arith.constant 0 : index
    %c0_15 = arith.constant 0 : index
    %28 = vector.load %arg6[%c0_14, %c0_15] : memref<8x1xf32, #tpu.memory_space<vmem>>, vector<8x1xf32>
    tpu.vector_store %arg6[%c0_14, %c0_15], %14 {strides = array<i32>} : memref<8x1xf32, #tpu.memory_space<vmem>>, vector<8x1xf32>,
    return
  }
  func.func @transform_0(%arg0: i32) -> (i32, i32) {
    %c0_i32 = arith.constant 0 : i32
    %c0_i32_0 = arith.constant 0 : i32
    return %arg0, %c0_i32 : i32, i32
  }
  func.func @transform_1(%arg0: i32) -> (i32, i32) {
    %c0_i32 = arith.constant 0 : i32
    %c0_i32_0 = arith.constant 0 : i32
    return %arg0, %c0_i32 : i32, i32
  }
  func.func @transform_2(%arg0: i32) -> (i32, i32) {
    %c0_i32 = arith.constant 0 : i32
    %c0_i32_0 = arith.constant 0 : i32
    return %arg0, %c0_i32 : i32, i32
  }
  func.func @transform_3(%arg0: i32) -> (i32, i32) {
    %c0_i32 = arith.constant 0 : i32
    %c0_i32_0 = arith.constant 0 : i32
    return %arg0, %c0_i32 : i32, i32
  }
  func.func @transform_4(%arg0: i32) -> (i32, i32) {
    %c0_i32 = arith.constant 0 : i32
    %c0_i32_0 = arith.constant 0 : i32
    return %arg0, %c0_i32 : i32, i32
  }
  func.func @transform_5(%arg0: i32) -> (i32, i32) {
    %c0_i32 = arith.constant 0 : i32
    %c0_i32_0 = arith.constant 0 : i32
    return %arg0, %c0_i32 : i32, i32
  }
}

</mosaic_0001>

<bundles_post_ra>
// kernel: tpu_custom_call.1
= control target key start
LH: loop header
LB: loop body
LE: loop exit
PB: predicated region body
PF: predicated region fallthrough
CT: control target
= control target key end

     0   :  { %s174_s0 = inlined_call_operand.vmem [shape: f32[8,128], index: 0, kind: input, shape index: {}]   ;;  %s175_s1 = inlined_call_operand.vmem [shape: f32[8,1], index: 1, kind: input, shape index: {}]   ;;  %s176_s2 = inlined_call_operand.vmem [shape: f32[8,1], index: 2, kind: input, shape index: {}]   ;;  %s177_s3 = inlined_call_operand.hbm [shape: f32[8,128], index: 3, kind: output, shape index: {0}]   ;;  %s178_s4 = inlined_call_operand.vmem [shape: f32[8,1], index: 4, kind: output, shape index: {1}]   ;;  %s179_s5 = inlined_call_operand.vmem [shape: f32[8,1], index: 5, kind: output, shape index: {2}]  }
   0x1   :  { %v18_v0 = vld [vmem:[%s174_s0] sm:$0xff] }
   0x2   :  { %11 = vsyncpa [#allocation3], 0  ;;  %19 = vadd.xlane.f32.xlu0 %v18_v0  ;;  %vm56_vm0 = vcmask 7168   ;;  %v113_v5 = vmov 0   ;;  %v38_v14 = vld [vmem:[%s175_s1] sm:$0xff]  ;;  %s114_s26 = smov [#allocation2]  }
   0x3   :  { %83 = vset.pattern.permute.xlu1 %v113_v5  ;;  %84 = vset.pattern.permute.xlu0 %v113_v5  ;;  %v40_v17 = vld [vmem:[%s176_s2] sm:$0xff]  ;;  %s65_s27 = sshll.u32 %s114_s26, 4  ;;  %s66_s27 = int_to_ptr.vmem [resolvable:$true] %s65_s27 }
   0x4   :  { %p94_p1 = scmp.lt.s32.totalorder %s66_s27, %s66_s27 }
  0x8f   :  { %v20_v1 = vpop.xlane.xlu0 %19 }
  0x90   :  { %v22_v2 = vmul.f32 0.0078125, %v20_v1 }
  0x92   :  { %57 = vst.msk [vmem:[%s178_s4] sm:$0xff] %vm56_vm0, %v22_v2  ;;  %v23_v3 = vsub.f32 %v18_v0, %v22_v2 }
  0x94   :  { %v24_v4 = vmul.f32 %v23_v3, %v23_v3 }
  0x96   :  { %25 = vadd.xlane.f32.xlu0 %v24_v4 }
 0x123   :  { %v26_v6 = vpop.xlane.xlu0 %25 }
 0x124   :  { %v27_v7 = vmul.f32 0.0078125, %v26_v6 }
 0x126   :  { %v28_v8 = vadd.f32 1e-05, %v27_v7 }
 0x128   :  { %85 = vrsqrt.f32 %v28_v8  ;;  %vm31_vm1 = vcmp.eq.f32.partialorder %v28_v8, inf  ;;  %v34_v11 = vand.u32 2147483648, %v28_v8  ;;  %vm33_vm2 = vcmp.eq.f32.partialorder %v28_v8, 0.0 }
 0x132   :  { %v86_v9 = vpop.eup %85 }
 0x133   :  { %v30_v10 = vmul.f32 %v86_v9, %v28_v8 }
 0x135   :  { %v32_v12 = vsel %vm31_vm1, %v28_v8, %v30_v10 }
 0x136   :  { %v35_v13 = vsel %vm33_vm2, %v34_v11, %v32_v12 }
 0x137   :  { %87 = vrcp.f32 %v35_v13  ;;  %58 = vst.msk [vmem:[%s179_s5] sm:$0xff] %vm56_vm0, %v35_v13  ;;  %s89_s5 = scalar_lea.vmem %s66_s27, 128 }
 0x138   :  { %p90_p0 = scmp.ne.s32.totalorder %s66_s27, %s89_s5  ;;  %p95_p2 = scmp.lt.s32.totalorder %s89_s5, %s89_s5 }
 0x13a   :  { %p96_p3 = por %p95_p2, %p94_p1 }
 0x13c   :  { %p97_p4 = pnand %p96_p3, %p90_p0 }
 0x141   :  { %v88_v15 = vpop.eup %87 }
 0x142   :  { %v39_v16 = vmul.f32 %v88_v15, %v38_v14 }
 0x144   :  { %45 = vperm.xlu1 %83, %v39_v16   ;;  %v41_v18 = vmul.f32 %v39_v16, %v22_v2 }
 0x146   :  { %v42_v19 = vsub.f32 %v40_v17, %v41_v18 }
 0x148   :  { %51 = vperm.xlu1 %83, %v42_v19  }
 0x1c3   :  { %v46_v20 = vpop.permute.xlu1 %45 }
 0x1c4   :  { %v48_v21 = vmul.f32 %v46_v20, %v18_v0 }
 0x1c7   :  { %v52_v22 = vpop.permute.xlu1 %51 }
 0x1c8   :  { %v54_v23 = vadd.f32 %v52_v22, %v48_v21 }
 0x1ca   :  { %55 = vst [vmem:[#allocation2] sm:$0xff] %v54_v23 }
 0x1cb   :  { %100 = shalt.err (!%p97_p4)
}
 0x1cc   :  { %s101_s28 = scalar_lea.hbm %s177_s3, 128 }
 0x1cd   :  { %p102_p5 = scmp.ne.s32.totalorder %s177_s3, %s101_s28  ;;  %p105_p6 = scmp.lt.u32.totalorder %s101_s28, %s177_s3 }
 0x1cf   :  { %p107_p7 = pnand %p105_p6, %p102_p5 }
 0x1d1   :  { %110 = shalt.err (!%p107_p7)
}
 0x1d2   :  { %68 = dma.vmem_to_hbm [thread:$0]  %s66_s27, 128, %s177_s3, [#allocation3]  }
 0x1d3   :  { %111 = dma.done.wait [#allocation3], 128  }
 0x1d4   :  { %112 = vsyncadd [#allocation3], 4294967168 }
 0x1d5   :  { %80 = vsyncpa [#allocation3], 1 }

</bundles_post_ra>
